<compile_context>
chip_gen: v5e
topology: v5e:2x2
jax: 0.10.0
libtpu: 0.0.40
codegen_flags: <defaults>
</compile_context>

<pallas_src>
import jax
import jax.numpy as jnp
from jax.experimental import pallas as pl
from jax.experimental.pallas import tpu as pltpu

H = W = 4          # spatial size implied by fc1 in_features = 16*4*4
CIN = 1
COUT = 16
HID = 64
NCLS = 10
NCLS_PAD = 128     # lane-dense output width (sliced back to NCLS outside)
KH = KW = 3


# --------------------------------------------------------------------------
# Kernel: relu(x @ Wconv + bconv) -> relu(. @ W1 + b1) -> . @ W2 + b2
# --------------------------------------------------------------------------
def _cnn_kernel(x_ref, wc_ref, bc_ref, w1_ref, b1_ref, w2_ref, b2_ref,
                out_ref):
    # Folded conv+BN: (TB, 16) @ (16, 256) -> f32, + bias, ReLU.
    y = jnp.maximum(
        jnp.dot(x_ref[...], wc_ref[...], preferred_element_type=jnp.float32)
        + bc_ref[...], 0.0)                                      # (TB, 256)

    # fc1 + ReLU (columns of y are already in torch flatten order c*HW + hw).
    h = jnp.maximum(
        jnp.dot(y.astype(jnp.bfloat16), w1_ref[...],
                preferred_element_type=jnp.float32) + b1_ref[...], 0.0)

    # fc2 (output padded to 128 lanes for dense stores), bf16 writeback.
    out = (jnp.dot(h.astype(jnp.bfloat16), w2_ref[...],
                   preferred_element_type=jnp.float32) + b2_ref[...])
    out_ref[...] = out.astype(out_ref.dtype)


# --------------------------------------------------------------------------
# Wrapper
# --------------------------------------------------------------------------
def cnn_forward(x_nchw, kparams, tile_b=256):
    """x_nchw: (N, 1, 4, 4) float32. Returns logits (N, 10) float32."""
    assert tile_b % 16 == 0, "tile_b must be a multiple of 16 (bf16 sublanes)"
    n = x_nchw.shape[0]
    # Don't over-pad tiny batches: shrink the tile to the batch (rounded to 16).
    tile_b = min(tile_b, pl.cdiv(n, 16) * 16)
    n_pad = pl.cdiv(n, tile_b) * tile_b

    x_flat = x_nchw.reshape(n, CIN * H * W).astype(jnp.bfloat16)  # (n, 16)
    if n_pad != n:
        x_flat = jnp.pad(x_flat, ((0, n_pad - n), (0, 0)))

    wc, bc, w1, b1, w2p, b2p = kparams
    weight_spec = lambda shape: pl.BlockSpec(shape, lambda i: (0, 0))

    out = pl.pallas_call(
        _cnn_kernel,
        out_shape=jax.ShapeDtypeStruct((n_pad, NCLS_PAD), jnp.bfloat16),
        grid=(n_pad // tile_b,),
        in_specs=[
            pl.BlockSpec((tile_b, CIN * H * W), lambda i: (i, 0)),
            weight_spec(wc.shape),
            weight_spec(bc.shape),
            weight_spec(w1.shape),
            weight_spec(b1.shape),
            weight_spec(w2p.shape),
            weight_spec(b2p.shape),
        ],
        out_specs=pl.BlockSpec((tile_b, NCLS_PAD), lambda i: (i, 0)),
        compiler_params=pltpu.CompilerParams(
            dimension_semantics=("parallel",)),
    )(x_flat, wc, bc, w1, b1, w2p, b2p)

    return out[:n, :NCLS].astype(jnp.float32)


# --------------------------------------------------------------------------
# Parameters
# --------------------------------------------------------------------------
def make_params(key):
    """Raw (torch-equivalent) parameters."""
    ks = jax.random.split(key, 8)
    conv_w = 0.1 * jax.random.normal(ks[0], (COUT, CIN, KH, KW), jnp.float32)
    conv_b = 0.1 * jax.random.normal(ks[1], (COUT,), jnp.float32)
    gamma = 1.0 + 0.1 * jax.random.normal(ks[2], (COUT,), jnp.float32)
    beta = 0.1 * jax.random.normal(ks[3], (COUT,), jnp.float32)
    run_mean = jnp.zeros((COUT,), jnp.float32)
    run_var = jnp.ones((COUT,), jnp.float32)
    eps = 1e-5
    # fc1 weight stored as (in=256, out=64); rows indexed by torch flatten
    # order c*HW + hw (i.e. the transpose of torch's (out, in) layout).
    w1 = 0.05 * jax.random.normal(ks[4], (COUT * H * W, HID), jnp.float32)
    b1 = 0.05 * jax.random.normal(ks[5], (HID,), jnp.float32)
    w2 = 0.05 * jax.random.normal(ks[6], (HID, NCLS), jnp.float32)
    b2 = 0.05 * jax.random.normal(ks[7], (NCLS,), jnp.float32)
    return (conv_w, conv_b, gamma, beta, run_mean, run_var, eps, w1, b1, w2, b2)


def _im2col(x_nchw):
    """(N, 1, 4, 4) -> (N*H*W, 9) patches; rows in NHW order, cols kh*3+kw."""
    xp = jnp.pad(x_nchw, ((0, 0), (0, 0), (1, 1), (1, 1)))
    cols = [xp[:, 0, di:di + H, dj:dj + W]
            for di in range(KH) for dj in range(KW)]
    return jnp.stack(cols, axis=-1).reshape(x_nchw.shape[0] * H * W, KH * KW)


def fold_params(raw):
    """Fold im2col+conv+bias+BN into a dense (16, 256) matrix, pad fc2."""
    conv_w, conv_b, gamma, beta, run_mean, run_var, eps, w1, b1, w2, b2 = raw

    bn_scale = gamma / jnp.sqrt(run_var + eps)                    # (16,)
    bn_shift = beta - run_mean * bn_scale
    wck = conv_w.reshape(COUT, KH * KW).T * bn_scale[None, :]     # (9, 16)
    bck = conv_b * bn_scale + bn_shift                            # (16,)

    # The conv on a 1x4x4 image is linear: apply it (in f32, once, at trace
    # time) to the 16 unit-basis images to get the full (16, 256) matrix with
    # columns in torch NCHW-flatten order c*HW + hw.
    eye_imgs = jnp.eye(H * W, dtype=jnp.float32).reshape(H * W, CIN, H, W)
    basis_patches = _im2col(eye_imgs)                             # (256, 9)
    conv_basis = basis_patches @ wck                              # (256, 16): [s*HW+hw, c]
    wc_full = conv_basis.reshape(H * W, H * W, COUT).transpose(0, 2, 1) \
                        .reshape(H * W, COUT * H * W)             # (16, 256)
    bc_full = jnp.repeat(bck, H * W).reshape(1, COUT * H * W)     # (1, 256)

    # Pad fc2 to 128 output lanes (zeros beyond NCLS -> outside slice exact).
    w2p = jnp.zeros((HID, NCLS_PAD), jnp.float32).at[:, :NCLS].set(w2)
    b2p = jnp.zeros((1, NCLS_PAD), jnp.float32).at[:, :NCLS].set(
        b2.reshape(1, NCLS))

    return (wc_full.astype(jnp.bfloat16),
            bc_full.astype(jnp.float32),
            w1.astype(jnp.bfloat16),
            b1.reshape(1, HID).astype(jnp.float32),
            w2p.astype(jnp.bfloat16),
            b2p.astype(jnp.float32))


# --------------------------------------------------------------------------
# References
# --------------------------------------------------------------------------
def reference_bf16(x_nchw, kparams):
    """Pure-JAX reference with the kernel's exact (bf16-operand) numerics."""
    wc, bc, w1, b1, w2p, b2p = kparams
    n = x_nchw.shape[0]
    xf = x_nchw.reshape(n, CIN * H * W).astype(jnp.bfloat16)
    y = jnp.maximum(
        jnp.dot(xf, wc, preferred_element_type=jnp.float32) + bc, 0.0)
    h = jnp.maximum(
        jnp.dot(y.astype(jnp.bfloat16), w1,
                preferred_element_type=jnp.float32) + b1, 0.0)
    out = jnp.dot(h.astype(jnp.bfloat16), w2p,
                  preferred_element_type=jnp.float32) + b2p
    return out[:, :NCLS].astype(jnp.bfloat16).astype(jnp.float32)


def reference_f32(x_nchw, raw):
    """Pure-JAX f32 reference with the original torch-module semantics."""
    conv_w, conv_b, gamma, beta, run_mean, run_var, eps, w1, b1, w2, b2 = raw
    n = x_nchw.shape[0]
    patches = _im2col(x_nchw)
    conv = patches @ conv_w.reshape(COUT, KH * KW).T + conv_b     # (n*HW, 16)
    bn = (conv - run_mean) * gamma / jnp.sqrt(run_var + eps) + beta
    y = jnp.maximum(bn, 0.0)
    flat = jnp.transpose(y.reshape(n, H * W, COUT), (0, 2, 1)).reshape(
        n, COUT * H * W)                                          # torch Flatten
    h = jnp.maximum(flat @ w1 + b1, 0.0)
    return h @ w2 + b2


# --------------------------------------------------------------------------
if __name__ == "__main__":
    key = jax.random.PRNGKey(0)
    k_x, k_p = jax.random.split(key)
    batch = 512                     # 2 grid steps of tile_b=256 (feeds both v7x TCs)
    x = jax.random.normal(k_x, (batch, CIN, H, W), jnp.float32)   # NCHW

    raw = make_params(k_p)
    kparams = fold_params(raw)

    out = jax.block_until_ready(cnn_forward(x, kparams, tile_b=256))
    assert out.shape == (batch, NCLS)

    ref_k = reference_bf16(x, kparams)     # same bf16/f32-acc numerics
    ref_f = reference_f32(x, raw)          # original f32 module semantics
    assert jnp.allclose(out, ref_k, atol=1e-3, rtol=1e-3)
    assert jnp.allclose(out, ref_f, atol=5e-2, rtol=5e-2)

    print("KERNEL_OK")
</pallas_src>

<mosaic_0001>
module attributes {stable_mosaic.version = 11 : i64} {
  func.func @_cnn_kernel(%arg0: i32, %arg1: memref<256x16xbf16, #tpu.memory_space<vmem>>, %arg2: memref<16x256xbf16, #tpu.memory_space<vmem>>, %arg3: memref<1x256xf32, #tpu.memory_space<vmem>>, %arg4: memref<256x64xbf16, #tpu.memory_space<vmem>>, %arg5: memref<1x64xf32, #tpu.memory_space<vmem>>, %arg6: memref<64x128xbf16, #tpu.memory_space<vmem>>, %arg7: memref<1x128xf32, #tpu.memory_space<vmem>>, %arg8: memref<256x128xbf16, #tpu.memory_space<vmem>>) attributes {dimension_semantics = [#tpu.dimension_semantics<parallel>], iteration_bounds = array<i64: 2>, scalar_prefetch = 0 : i64, scratch_operands = 0 : i64, tpu.core_type = #tpu.core_type<tc>, window_params = [{transform_indices = @transform_0, window_bounds = array<i64: 256, 16>}, {pipeline_mode = #tpu.pipeline_mode<synchronous>, transform_indices = @transform_1, window_bounds = array<i64: 16, 256>}, {pipeline_mode = #tpu.pipeline_mode<synchronous>, transform_indices = @transform_2, window_bounds = array<i64: 1, 256>}, {pipeline_mode = #tpu.pipeline_mode<synchronous>, transform_indices = @transform_3, window_bounds = array<i64: 256, 64>}, {pipeline_mode = #tpu.pipeline_mode<synchronous>, transform_indices = @transform_4, window_bounds = array<i64: 1, 64>}, {pipeline_mode = #tpu.pipeline_mode<synchronous>, transform_indices = @transform_5, window_bounds = array<i64: 64, 128>}, {pipeline_mode = #tpu.pipeline_mode<synchronous>, transform_indices = @transform_6, window_bounds = array<i64: 1, 128>}, {transform_indices = @transform_7, window_bounds = array<i64: 256, 128>}]} {
    %c0 = arith.constant 0 : index
    %c0_0 = arith.constant 0 : index
    %0 = vector.load %arg1[%c0, %c0_0] : memref<256x16xbf16, #tpu.memory_space<vmem>>, vector<256x16xbf16>
    %c0_1 = arith.constant 0 : index
    %c0_2 = arith.constant 0 : index
    %1 = vector.load %arg2[%c0_1, %c0_2] : memref<16x256xbf16, #tpu.memory_space<vmem>>, vector<16x256xbf16>
    %cst = arith.constant dense<0.000000e+00> : vector<256x256xf32>
    %2 = tpu.matmul %0, %1, %cst {dimension_numbers = #tpu.dot_dimension_numbers<[1], [0], [0], [1], [0, 0, 1, 1], [], []>} : vector<256x16xbf16>, vector<16x256xbf16>, vector<256x256xf32> -> vector<256x256xf32>
    %c0_3 = arith.constant 0 : index
    %c0_4 = arith.constant 0 : index
    %3 = vector.load %arg3[%c0_3, %c0_4] : memref<1x256xf32, #tpu.memory_space<vmem>>, vector<1x256xf32>
    %4 = vector.broadcast %3 : vector<1x256xf32> to vector<256x256xf32>
    %5 = arith.addf %2, %4 : vector<256x256xf32>
    %cst_5 = arith.constant 0.000000e+00 : f32
    %6 = vector.broadcast %cst_5 : f32 to vector<256x256xf32>
    %7 = arith.maximumf %5, %6 : vector<256x256xf32>
    %8 = arith.truncf %7 : vector<256x256xf32> to vector<256x256xbf16>
    %c0_6 = arith.constant 0 : index
    %c0_7 = arith.constant 0 : index
    %9 = vector.load %arg4[%c0_6, %c0_7] : memref<256x64xbf16, #tpu.memory_space<vmem>>, vector<256x64xbf16>
    %cst_8 = arith.constant dense<0.000000e+00> : vector<256x64xf32>
    %10 = tpu.matmul %8, %9, %cst_8 {dimension_numbers = #tpu.dot_dimension_numbers<[1], [0], [0], [1], [0, 0, 1, 1], [], []>} : vector<256x256xbf16>, vector<256x64xbf16>, vector<256x64xf32> -> vector<256x64xf32>
    %c0_9 = arith.constant 0 : index
    %c0_10 = arith.constant 0 : index
    %11 = vector.load %arg5[%c0_9, %c0_10] : memref<1x64xf32, #tpu.memory_space<vmem>>, vector<1x64xf32>
    %12 = vector.broadcast %11 : vector<1x64xf32> to vector<256x64xf32>
    %13 = arith.addf %10, %12 : vector<256x64xf32>
    %cst_11 = arith.constant 0.000000e+00 : f32
    %14 = vector.broadcast %cst_11 : f32 to vector<256x64xf32>
    %15 = arith.maximumf %13, %14 : vector<256x64xf32>
    %16 = arith.truncf %15 : vector<256x64xf32> to vector<256x64xbf16>
    %c0_12 = arith.constant 0 : index
    %c0_13 = arith.constant 0 : index
    %17 = vector.load %arg6[%c0_12, %c0_13] : memref<64x128xbf16, #tpu.memory_space<vmem>>, vector<64x128xbf16>
    %cst_14 = arith.constant dense<0.000000e+00> : vector<256x128xf32>
    %18 = tpu.matmul %16, %17, %cst_14 {dimension_numbers = #tpu.dot_dimension_numbers<[1], [0], [0], [1], [0, 0, 1, 1], [], []>} : vector<256x64xbf16>, vector<64x128xbf16>, vector<256x128xf32> -> vector<256x128xf32>
    %c0_15 = arith.constant 0 : index
    %c0_16 = arith.constant 0 : index
    %19 = vector.load %arg7[%c0_15, %c0_16] : memref<1x128xf32, #tpu.memory_space<vmem>>, vector<1x128xf32>
    %20 = vector.broadcast %19 : vector<1x128xf32> to vector<256x128xf32>
    %21 = arith.addf %18, %20 : vector<256x128xf32>
    %22 = arith.truncf %21 : vector<256x128xf32> to vector<256x128xbf16>
    %c0_17 = arith.constant 0 : index
    %c0_18 = arith.constant 0 : index
    %23 = vector.load %arg8[%c0_17, %c0_18] : memref<256x128xbf16, #tpu.memory_space<vmem>>, vector<256x128xbf16>
    tpu.vector_store %arg8[%c0_17, %c0_18], %22 {strides = array<i32>} : memref<256x128xbf16, #tpu.memory_space<vmem>>, vector<256x128xbf16>,
    return
  }
  func.func @transform_0(%arg0: i32) -> (i32, i32) {
    %c0_i32 = arith.constant 0 : i32
    %c0_i32_0 = arith.constant 0 : i32
    return %arg0, %c0_i32 : i32, i32
  }
  func.func @transform_1(%arg0: i32) -> (i32, i32) {
    %c0_i32 = arith.constant 0 : i32
    %c0_i32_0 = arith.constant 0 : i32
    %c0_i32_1 = arith.constant 0 : i32
    return %c0_i32, %c0_i32_0 : i32, i32
  }
  func.func @transform_2(%arg0: i32) -> (i32, i32) {
    %c0_i32 = arith.constant 0 : i32
    %c0_i32_0 = arith.constant 0 : i32
    %c0_i32_1 = arith.constant 0 : i32
    return %c0_i32, %c0_i32_0 : i32, i32
  }
  func.func @transform_3(%arg0: i32) -> (i32, i32) {
    %c0_i32 = arith.constant 0 : i32
    %c0_i32_0 = arith.constant 0 : i32
    %c0_i32_1 = arith.constant 0 : i32
    return %c0_i32, %c0_i32_0 : i32, i32
  }
  func.func @transform_4(%arg0: i32) -> (i32, i32) {
    %c0_i32 = arith.constant 0 : i32
    %c0_i32_0 = arith.constant 0 : i32
    %c0_i32_1 = arith.constant 0 : i32
    return %c0_i32, %c0_i32_0 : i32, i32
  }
  func.func @transform_5(%arg0: i32) -> (i32, i32) {
    %c0_i32 = arith.constant 0 : i32
    %c0_i32_0 = arith.constant 0 : i32
    %c0_i32_1 = arith.constant 0 : i32
    return %c0_i32, %c0_i32_0 : i32, i32
  }
  func.func @transform_6(%arg0: i32) -> (i32, i32) {
    %c0_i32 = arith.constant 0 : i32
    %c0_i32_0 = arith.constant 0 : i32
    %c0_i32_1 = arith.constant 0 : i32
    return %c0_i32, %c0_i32_0 : i32, i32
  }
  func.func @transform_7(%arg0: i32) -> (i32, i32) {
    %c0_i32 = arith.constant 0 : i32
    %c0_i32_0 = arith.constant 0 : i32
    return %arg0, %c0_i32 : i32, i32
  }
}

</mosaic_0001>

<bundles_post_ra>
// kernel: tpu_custom_call.1
= control target key start
LH: loop header
LB: loop body
LE: loop exit
PB: predicated region body
PF: predicated region fallthrough
CT: control target
= control target key end

     0   :  { %12 = vsyncpa [#allocation3], 0  ;;  %s2384_s0 = inlined_call_operand.vmem [shape: bf16[512,16], index: 0, kind: input, shape index: {}]   ;;  %s2385_s1 = inlined_call_operand.vmem [shape: bf16[16,256], index: 1, kind: input, shape index: {}]   ;;  %s2386_s2 = inlined_call_operand.vmem [shape: f32[1,256], index: 2, kind: input, shape index: {}]   ;;  %s2387_s3 = inlined_call_operand.vmem [shape: bf16[256,64], index: 3, kind: input, shape index: {}]   ;;  %s2388_s4 = inlined_call_operand.vmem [shape: f32[1,64], index: 4, kind: input, shape index: {}]   ;;  %s2389_s5 = inlined_call_operand.vmem [shape: bf16[64,128], index: 5, kind: input, shape index: {}]   ;;  %s2390_s6 = inlined_call_operand.vmem [shape: f32[1,128], index: 6, kind: input, shape index: {}]   ;;  %s2391_s7 = inlined_call_operand.hbm [shape: bf16[512,128], index: 7, kind: output, shape index: {}]  }
   0x1   :  { %14 = vsyncpa [#allocation3 + $0x1], 0  ;;  %s1910_s24 = smov 0   ;;  %s1912_s25 = smov 0  }
   0x2   :  { %s1914_s26 = smov 0   ;;  %s1916_s27 = smov 0  }
   0x3 LB: > { %s1931_s28 = sadd.s32 4294967295, %s1866_s27   ;;  %s1408_s29 = sadd.s32 4294967294, %s1866_s27   ;;  %s1866_s27 = sphi %s1916_s27, %s2397_s27   ;;  %s1862_s26 = sphi %s1914_s26, %s2396_s26   ;;  %s1858_s25 = sphi %s1912_s25, %s2395_s25   ;;  %s1854_s24 = sphi %s1910_s24, %s2394_s24  }
   0x4   : > { %s1935_s30 = sadd.s32 1, %s1866_s27   ;;  %s179_s8 = sadd.s32 1, %s1862_s26 }
   0x5   : > { %s176_s9 = ssub.s32 %s1866_s27, %s1935_s30  ;;  %p189_p0 = scmp.ne.s32.totalorder %s1862_s26, %s1858_s25 }
   0x6   : > { %p177_p1 = scmp.eq.s32.totalorder %s176_s9, 0  ;;  %p190_p2 = scmp.eq.s32.totalorder %s1931_s28, 1 }
   0x7   : > { %p195_p3 = scmp.ne.s32.totalorder %s1858_s25, %s1854_s24  ;;  %p196_p4 = scmp.eq.s32.totalorder %s1408_s29, 1 }
   0x8   : > { %s1946_s10 = scalar_select %p177_p1, %s1862_s26, %s179_s8  }
   0x9   : > { %p1948_p5 = por %p190_p2, %p189_p0  ;;  %p1952_p6 = por %p196_p4, %p195_p3 }
   0xa   : > { %p1411_p7 = scmp.ge.s32.totalorder %s1866_s27, 1  ;;  %p241_p8 = scmp.lt.s32.totalorder %s1866_s27, 3 }
   0xc   : > { %p242_p9 = pnand %p1411_p7, %p241_p8 }
   0xd   : > { %s1413_s17 = sshll.u32 (!%p242_p9), %s1931_s28, 5  ;;  %s1658_s20 = sshll.u32 (!%p242_p9), %s1931_s28, 7 }
   0xe   : > { %245 = sbr.rel (%p242_p9) target bundleno = 779 (0x30b), region = 48  ;;  %p274_p10 = scmp.lt.s32.totalorder (!%p242_p9), %s1413_s17, 63 }
   0xf   : > { %s1342_s23 = scalar_lea.hbm (!%p242_p9), %s2391_s7, %s1658_s20 }
  0x10   : > { %s1345_s9 = sshll.u32 (!%p242_p9), %s1342_s23, 4  ;;  %s1346_s9 = int_to_ptr.hbm [resolvable:$true] %s1345_s9 }
  0x11   : > { %s1818_s14 = sshra.s32 (!%p242_p9), %s1346_s9, 4  ;;  %s1819_s14 = int_to_ptr.hbm [resolvable:$true] %s1818_s14 }
  0x12   : > { %s1820_s28 = scalar_lea.hbm (!%p242_p9), %s1819_s14, 128  ;;  %p1825_p0 = scmp.lt.s32.totalorder (!%p242_p9), %s1819_s14, %s2391_s7 }
  0x13   : > { %v1481_v0 = vld [vmem:[%s2385_s1] sm:$0xf]  ;;  %v1637_v1 = vld [vmem:[%s2385_s1 + $0x4] sm:$0xf0]  ;;  %v1636_v3 = vld [vmem:[%s2385_s1 + $0x4] sm:$0xf]  ;;  %p1821_p11 = scmp.ne.s32.totalorder %s1819_s14, %s1820_s28 }
  0x14   : > { %v1482_v2 = vor.u32 %v1637_v1, %v1481_v0  ;;  %v1483_v4 = vld [vmem:[%s2385_s1 + $0x8] sm:$0xf0]  ;;  %s2399_s17 = smov (!%p274_p10, %s1413_s17), 63  ;;  %vm411_vm0 = vcmask 130048   ;;  %v1645_v17 = vld [vmem:[%s2387_s3 + $0x38] sm:$0xff]  ;;  %v1644_v18 = vld [vmem:[%s2387_s3 + $0x30] sm:$0xff] }
  0x15   : > { %v1486_v5 = vor.u32 %v1636_v3, %v1483_v4  ;;  %s1414_s22 = sshll.u32 %s2399_s17, 2  ;;  %v1643_v20 = vld [vmem:[%s2387_s3 + $0x28] sm:$0xff]  ;;  %v1642_v21 = vld [vmem:[%s2387_s3 + $0x20] sm:$0xff]  ;;  %v1641_v22 = vld [vmem:[%s2387_s3 + $0x18] sm:$0xff]  ;;  %vm1128_vm1 = vcmask 523264   ;;  %p1822_p12 = pnand %p1821_p11, %p1948_p5 }
  0x16   : > { %467 = vmatpush.bf16.msra.mxu0 %v1482_v2  ;;  %1754 = vmatpush.bf16.msra.mxu1 %v1482_v2  ;;  %s1974_s8 = scalar_lea.vmem %s2384_s0, %s1414_s22  ;;  %v1640_v23 = vld [vmem:[%s2387_s3 + $0x10] sm:$0xff]  ;;  %v1639_v24 = vld [vmem:[%s2387_s3 + $0x8] sm:$0xff]  ;;  %v1638_v25 = vld [vmem:[%s2387_s3] sm:$0xff]  ;;  %s1824_s17 = scalar_lea.hbm %s2391_s7, 256 }
  0x17   : > { %1755 = vmatpush.bf16.msra.mxu2 %v1482_v2  ;;  %1756 = vmatpush.bf16.msra.mxu3 %v1482_v2  ;;  %v1620_v6 = vld [vmem:[%s1974_s8] sm:$0xff]  ;;  %v1978_v7 = vld [vmem:[%s1974_s8 + $0x28] sm:$0xff]  ;;  %v1985_v9 = vld [vmem:[%s1974_s8 + $0x30] sm:$0xff]  ;;  %p1823_p13 = pneg %p1822_p12  ;;  %p1826_p1 = scmp.lt.s32.totalorder %s1824_s17, %s1820_s28 }
  0x18   : > { %v1621_v8 = vld [vmem:[%s1974_s8 + $0x8] sm:$0xff]  ;;  %v1622_v10 = vld [vmem:[%s1974_s8 + $0x10] sm:$0xff]  ;;  %v1992_v11 = vld [vmem:[%s1974_s8 + $0x38] sm:$0xff] }
  0x19   : > { %1487 = vmatmul.msk.bf16.vlgmr.msra.gmra.mxu0 %vm411_vm0, %v1620_v6  ;;  %1492 = vmatmul.msk.bf16.vlgmr.msra.gmra.mxu1 %vm411_vm0, %v1978_v7  ;;  %v1623_v12 = vld [vmem:[%s1974_s8 + $0x18] sm:$0xff]  ;;  %v1999_v13 = vld [vmem:[%s1974_s8 + $0x40] sm:$0xff]  ;;  %v2006_v15 = vld [vmem:[%s1974_s8 + $0x48] sm:$0xff]  ;;  %p1827_p2 = por %p1826_p1, %p1825_p0 }
  0x1a   : > { %556 = vmatpush.bf16.msrb.mxu1 %v1486_v5  ;;  %v1624_v14 = vld [vmem:[%s1974_s8 + $0x20] sm:$0xff]  ;;  %v2012_v16 = vld [vmem:[%s1974_s8 + $0x50] sm:$0xff]  ;;  %v2024_v19 = vld [vmem:[%s1974_s8 + $0x58] sm:$0xff] }
  0x1b   : > { %1497 = vmatmul.msk.bf16.vlgmr.msra.gmra.mxu2 %vm411_vm0, %v2012_v16  ;;  %v2049_v26 = vld [vmem:[%s1974_s8 + $0x60] sm:$0xff]  ;;  %v1653_v27 = vld [vmem:[%s2387_s3 + $0x78] sm:$0xff]  ;;  %v2066_v32 = vld [vmem:[%s1974_s8 + $0x68] sm:$0xff]  ;;  %p1828_p3 = pnand %p1827_p2, %p1823_p13 }
  0x1c   : > { %866 = vmatpush.bf16.msrb.mxu2 %v1645_v17  ;;  %1499 = vmatmul.msk.bf16.vlgmr.msra.gmra.mxu3 %vm411_vm0, %v2049_v26  ;;  %v2059_v28 = vld [vmem:[%s2386_s2] sm:$0x3]  ;;  %v1652_v33 = vld [vmem:[%s2387_s3 + $0x70] sm:$0xff]  ;;  %v1651_v46 = vld [vmem:[%s2387_s3 + $0x68] sm:$0xff] }
  0x1d   : > { %955 = vmatpush.bf16.msrb.mxu3 %v1653_v27  ;;  %v2062_v31 = vperm.slane %v2059_v28, 0  ;;  %v2084_v49 = vld [vmem:[%s1974_s8 + $0x70] sm:$0xff]  ;;  %v1650_v50 = vld [vmem:[%s2387_s3 + $0x60] sm:$0xff]  ;;  %v1649_v63 = vld [vmem:[%s2387_s3 + $0x58] sm:$0xff] }
  0x1e   : > { %v2103_v2 = vld [vmem:[%s1974_s8 + $0x78] sm:$0xff]  ;;  %v1648_v3 = vld [vmem:[%s2387_s3 + $0x50] sm:$0xff]  ;;  %s270_s8 = sand.u32 1, %s1858_s25  }
  0x1f   : > { %s1412_s18 = sshll.u32 %s270_s8, 7  ;;  %s1331_s13 = scalar_lea.sflag [#allocation3], %s270_s8 }
  0x20   : > { %867 = vmatpush.bf16.msrb.mxu2 %v1644_v18  ;;  %s2283_s19 = scalar_lea.vmem [#allocation2], %s1412_s18 }
  0x21   : > { %956 = vmatpush.bf16.msrb.mxu3 %v1652_v33  ;;  %s1343_s29 = sshll.u32 %s2283_s19, 4  ;;  %s1344_s29 = int_to_ptr.vmem [resolvable:$true] %s1343_s29 }
  0x24   : > { %868 = vmatpush.bf16.msrb.mxu2 %v1643_v20 }
  0x25   : > { %957 = vmatpush.bf16.msrb.mxu3 %v1651_v46 }
  0x28   : > { %869 = vmatpush.bf16.msrb.mxu2 %v1642_v21 }
  0x29   : > { %1488 = vmatmul.msk.bf16.gmra.mxu0 %vm411_vm0, %v1621_v8  ;;  %1493 = vmatmul.msk.bf16.gmra.mxu1 %vm411_vm0, %v1985_v9 }
  0x2a   : > { %958 = vmatpush.bf16.msrb.mxu3 %v1650_v50 }
  0x2b   : > { %1498 = vmatmul.msk.bf16.gmra.mxu2 %vm411_vm0, %v2024_v19 }
  0x2c   : > { %870 = vmatpush.bf16.msrb.mxu2 %v1641_v22  ;;  %1500 = vmatmul.msk.bf16.gmra.mxu3 %vm411_vm0, %v2066_v32  ;;  %v1647_v22 = vld [vmem:[%s2387_s3 + $0x48] sm:$0xff] }
  0x2e   : > { %959 = vmatpush.bf16.msrb.mxu3 %v1649_v63 }
  0x30   : > { %871 = vmatpush.bf16.msrb.mxu2 %v1640_v23 }
  0x32   : > { %960 = vmatpush.bf16.msrb.mxu3 %v1648_v3 }
  0x34   : > { %872 = vmatpush.bf16.msrb.mxu2 %v1639_v24 }
  0x36   : > { %961 = vmatpush.bf16.msrb.mxu3 %v1647_v22 }
  0x38   : > { %873 = vmatpush.bf16.msrb.mxu2 %v1638_v25  ;;  %v1646_v25 = vld [vmem:[%s2387_s3 + $0x40] sm:$0xff] }
  0x39   : > { %1489 = vmatmul.msk.bf16.gmra.mxu0 %vm411_vm0, %v1622_v10  ;;  %1494 = vmatmul.msk.bf16.gmra.mxu1 %vm411_vm0, %v1992_v11 }
  0x3a   : > { %962 = vmatpush.bf16.msrb.mxu3 %v1646_v25 }
  0x3c   : > { %1501 = vmatmul.msk.bf16.gmra.mxu3 %vm411_vm0, %v2084_v49 }
  0x49   : > { %1490 = vmatmul.msk.bf16.gmra.mxu0 %vm411_vm0, %v1623_v12  ;;  %1495 = vmatmul.msk.bf16.gmra.mxu1 %vm411_vm0, %v1999_v13 }
  0x4c   : > { %1502 = vmatmul.msk.bf16.gmra.mxu3 %vm411_vm0, %v2103_v2 }
  0x59   : > { %1491 = vmatmul.msk.bf16.gmra.mxu0 %vm411_vm0, %v1624_v14  ;;  %1496 = vmatmul.msk.bf16.gmra.mxu1 %vm411_vm0, %v2006_v15 }
  0x69   : > { %1503 = vmatmul.msk.bf16.vlgmr.msrb.gmra.mxu1 %vm411_vm0, %v1620_v6 }
  0x79   : > { %1504 = vmatmul.msk.bf16.gmra.mxu1 %vm411_vm0, %v1621_v8 }
  0x89   : > { %1505 = vmatmul.msk.bf16.gmra.mxu1 %vm411_vm0, %v1622_v10 }
  0x96   : > { %v469_v29 = vpop.f32.mrf.mxu0  ;;  %v494_v30 = vpop.f32.mrf.mxu1 }
  0x97   : > { %v470_v34 = vadd.f32 %v469_v29, %v2062_v31  ;;  %v495_v35 = vadd.f32 %v494_v30, %v2062_v31 }
  0x99   : > { %1506 = vmatmul.msk.bf16.gmra.mxu1 %vm411_vm0, %v1623_v12  ;;  %v638_v38 = vmax.f32 %v470_v34, 0.0  ;;  %v658_v41 = vmax.f32 %v495_v35, 0.0 }
  0x9e   : > { %v471_v36 = vpop.f32.mrf.mxu0  ;;  %v496_v37 = vpop.f32.mrf.mxu1 }
  0x9f   : > { %v472_v39 = vadd.f32 %v471_v36, %v2062_v31  ;;  %v497_v40 = vadd.f32 %v496_v37, %v2062_v31 }
  0xa1   : > { %v640_v42 = vmax.f32 %v472_v39, 0.0  ;;  %v660_v43 = vmax.f32 %v497_v40, 0.0 }
  0xa3   : > { %v702_v44 = vpack.c.bf16 %v640_v42, %v638_v38  ;;  %v2077_v45 = vpack.c.bf16 %v660_v43, %v658_v41 }
  0xa5   : > { %874 = vmatmul.bf16.vlgmr.msrb.gmra.mxu2 %v702_v44 }
  0xa6   : > { %v474_v47 = vpop.f32.mrf.mxu0  ;;  %v499_v48 = vpop.f32.mrf.mxu1 }
  0xa7   : > { %v475_v51 = vadd.f32 %v474_v47, %v2062_v31  ;;  %v500_v52 = vadd.f32 %v499_v48, %v2062_v31 }
  0xa9   : > { %1507 = vmatmul.msk.bf16.gmra.mxu1 %vm411_vm0, %v1624_v14  ;;  %v642_v55 = vmax.f32 %v475_v51, 0.0  ;;  %v662_v58 = vmax.f32 %v500_v52, 0.0 }
  0xae   : > { %v476_v53 = vpop.f32.mrf.mxu0  ;;  %v501_v54 = vpop.f32.mrf.mxu1 }
  0xaf   : > { %v477_v56 = vadd.f32 %v476_v53, %v2062_v31  ;;  %v502_v57 = vadd.f32 %v501_v54, %v2062_v31 }
  0xb1   : > { %v644_v59 = vmax.f32 %v477_v56, 0.0  ;;  %v664_v60 = vmax.f32 %v502_v57, 0.0 }
  0xb3   : > { %v704_v61 = vpack.c.bf16 %v644_v59, %v642_v55  ;;  %v2095_v62 = vpack.c.bf16 %v664_v60, %v662_v58 }
  0xb5   : > { %879 = vmatmul.bf16.gmra.mxu2 %v704_v61 }
  0xb6   : > { %v479_v0 = vpop.f32.mrf.mxu0  ;;  %v504_v1 = vpop.f32.mrf.mxu1 }
  0xb7   : > { %v480_v4 = vadd.f32 %v479_v0, %v2062_v31  ;;  %v505_v5 = vadd.f32 %v504_v1, %v2062_v31 }
  0xb9   : > { %1508 = vmatmul.msk.bf16.gmra.mxu1 %vm411_vm0, %v1978_v7  ;;  %v646_v10 = vmax.f32 %v480_v4, 0.0  ;;  %v666_v14 = vmax.f32 %v505_v5, 0.0 }
  0xbe   : > { %v481_v6 = vpop.f32.mrf.mxu0  ;;  %v506_v8 = vpop.f32.mrf.mxu1 }
  0xbf   : > { %v482_v12 = vadd.f32 %v481_v6, %v2062_v31  ;;  %v507_v7 = vadd.f32 %v506_v8, %v2062_v31 }
  0xc1   : > { %v648_v17 = vmax.f32 %v482_v12, 0.0  ;;  %v668_v18 = vmax.f32 %v507_v7, 0.0 }
  0xc3   : > { %v706_v20 = vpack.c.bf16 %v648_v17, %v646_v10  ;;  %v2114_v21 = vpack.c.bf16 %v668_v18, %v666_v14  ;;  %v519_v10 = vpop.f32.mrf.mxu2 }
  0xc5   : > { %884 = vmatmul.bf16.gmra.mxu2 %v706_v20 }
  0xc6   : > { %v484_v23 = vpop.f32.mrf.mxu0  ;;  %v509_v24 = vpop.f32.mrf.mxu1 }
  0xc7   : > { %v485_v27 = vadd.f32 %v484_v23, %v2062_v31  ;;  %v510_v29 = vadd.f32 %v509_v24, %v2062_v31 }
  0xc9   : > { %1509 = vmatmul.msk.bf16.gmra.mxu1 %vm411_vm0, %v1985_v9  ;;  %v650_v34 = vmax.f32 %v485_v27, 0.0  ;;  %v670_v37 = vmax.f32 %v510_v29, 0.0 }
  0xcb   : > { %v521_v20 = vpop.f32.mrf.mxu2 }
  0xce   : > { %v486_v30 = vpop.f32.mrf.mxu0  ;;  %v511_v33 = vpop.f32.mrf.mxu1 }
  0xcf   : > { %v487_v35 = vadd.f32 %v486_v30, %v2062_v31  ;;  %v512_v36 = vadd.f32 %v511_v33, %v2062_v31 }
  0xd1   : > { %v652_v38 = vmax.f32 %v487_v35, 0.0  ;;  %v672_v39 = vmax.f32 %v512_v36, 0.0 }
  0xd3   : > { %v708_v9 = vpack.c.bf16 %v652_v38, %v650_v34  ;;  %v718_v40 = vpack.c.bf16 %v672_v39, %v670_v37  ;;  %v524_v25 = vpop.f32.mrf.mxu2 }
  0xd5   : > { %889 = vmatmul.bf16.gmra.mxu2 %v708_v9 }
  0xd6   : > { %v489_v41 = vpop.f32.mrf.mxu0  ;;  %v514_v42 = vpop.f32.mrf.mxu1 }
  0xd7   : > { %v490_v43 = vadd.f32 %v489_v41, %v2062_v31  ;;  %v515_v44 = vadd.f32 %v514_v42, %v2062_v31  ;;  %v522_v41 = vadd.f32 %v521_v20, %v2062_v31 }
  0xd9   : > { %1510 = vmatmul.msk.bf16.gmra.mxu1 %vm411_vm0, %v1992_v11  ;;  %v654_v48 = vmax.f32 %v490_v43, 0.0  ;;  %v674_v52 = vmax.f32 %v515_v44, 0.0  ;;  %v2135_v11 = vperm.slane %v2059_v28, 1  ;;  %v680_v43 = vmax.f32 %v522_v41, 0.0 }
  0xdb   : > { %v526_v30 = vpop.f32.mrf.mxu2 }
  0xde   : > { %v491_v46 = vpop.f32.mrf.mxu0  ;;  %v516_v47 = vpop.f32.mrf.mxu1 }
  0xdf   : > { %v492_v50 = vadd.f32 %v491_v46, %v2062_v31  ;;  %v517_v51 = vadd.f32 %v516_v47, %v2062_v31 }
  0xe1   : > { %v656_v53 = vmax.f32 %v492_v50, 0.0  ;;  %v676_v54 = vmax.f32 %v517_v51, 0.0 }
  0xe3   : > { %v710_v55 = vpack.c.bf16 %v656_v53, %v654_v48  ;;  %v720_v56 = vpack.c.bf16 %v676_v54, %v674_v52  ;;  %v1656_v54 = vld [vmem:[%s2389_s5 + $0x10] sm:$0xff] }
  0xe5   : > { %894 = vmatmul.bf16.gmra.mxu2 %v710_v55 }
  0xe6   : > { %v558_v57 = vpop.f32.mrf.mxu1 }
  0xe7   : > { %v559_v58 = vadd.f32 %v558_v57, %v2135_v11  ;;  %v525_v57 = vadd.f32 %v524_v25, %v2062_v31 }
  0xe9   : > { %1511 = vmatmul.msk.bf16.gmra.mxu1 %vm411_vm0, %v1999_v13  ;;  %v639_v61 = vmax.f32 %v559_v58, 0.0  ;;  %v527_v58 = vadd.f32 %v526_v30, %v2062_v31 }
  0xee   : > { %v560_v59 = vpop.f32.mrf.mxu1 }
  0xef   : > { %v561_v60 = vadd.f32 %v560_v59, %v2135_v11 }
  0xf1   : > { %v641_v63 = vmax.f32 %v561_v60, 0.0  ;;  %v682_v60 = vmax.f32 %v525_v57, 0.0 }
  0xf3   : > { %v703_v0 = vpack.c.bf16 %v641_v63, %v639_v61  ;;  %v684_v61 = vmax.f32 %v527_v58, 0.0 }
  0xf5   : > { %899 = vmatmul.bf16.gmra.mxu2 %v2077_v45  ;;  %963 = vmatmul.bf16.vlgmr.msrb.gmra.mxu3 %v703_v0 }
  0xf6   : > { %v563_v1 = vpop.f32.mrf.mxu1 }
  0xf7   : > { %v564_v28 = vadd.f32 %v563_v1, %v2135_v11 }
  0xf9   : > { %1512 = vmatmul.msk.bf16.gmra.mxu1 %vm411_vm0, %v2006_v15  ;;  %v643_v4 = vmax.f32 %v564_v28, 0.0 }
  0xfe   : > { %v565_v3 = vpop.f32.mrf.mxu1 }
  0xff   : > { %v566_v13 = vadd.f32 %v565_v3, %v2135_v11 }
 0x101   : > { %v645_v5 = vmax.f32 %v566_v13, 0.0  ;;  %v724_v13 = vpack.c.bf16 %v684_v61, %v682_v60 }
 0x103   : > { %v705_v6 = vpack.c.bf16 %v645_v5, %v643_v4 }
 0x105   : > { %904 = vmatmul.bf16.gmra.mxu2 %v2095_v62  ;;  %968 = vmatmul.bf16.gmra.mxu3 %v705_v6 }
 0x106   : > { %v568_v8 = vpop.f32.mrf.mxu1 }
 0x107   : > { %v569_v45 = vadd.f32 %v568_v8, %v2135_v11 }
 0x109   : > { %1513 = vmatmul.msk.bf16.gmra.mxu1 %vm411_vm0, %v2012_v16  ;;  %v647_v7 = vmax.f32 %v569_v45, 0.0 }
 0x10e   : > { %v570_v12 = vpop.f32.mrf.mxu1 }
 0x10f   : > { %v571_v15 = vadd.f32 %v570_v12, %v2135_v11 }
 0x111   : > { %v649_v14 = vmax.f32 %v571_v15, 0.0 }
 0x113   : > { %v707_v17 = vpack.c.bf16 %v649_v14, %v647_v7 }
 0x115   : > { %909 = vmatmul.bf16.gmra.mxu2 %v2114_v21  ;;  %973 = vmatmul.bf16.gmra.mxu3 %v707_v17  ;;  %v1657_v21 = vld [vmem:[%s2389_s5 + $0x18] sm:$0xff] }
 0x116   : > { %v573_v18 = vpop.f32.mrf.mxu1  ;;  %1181 = vmatpush.bf16.msrb.mxu0 %v1657_v21  ;;  %1757 = vmatpush.bf16.msra.mxu2 %v1657_v21 }
 0x117   : > { %v574_v62 = vadd.f32 %v573_v18, %v2135_v11 }
 0x119   : > { %1514 = vmatmul.msk.bf16.gmra.mxu1 %vm411_vm0, %v2024_v19  ;;  %v651_v23 = vmax.f32 %v574_v62, 0.0  ;;  %v529_v19 = vpop.f32.mrf.mxu3 }
 0x11a   : > { %1182 = vmatpush.bf16.msrb.mxu0 %v1656_v54  ;;  %1758 = vmatpush.bf16.msra.mxu2 %v1656_v54  ;;  %v530_v45 = vadd.f32 %v529_v19, %v2062_v31 }
 0x11c   : > { %v686_v17 = vmax.f32 %v530_v45, 0.0 }
 0x11e   : > { %v575_v16 = vpop.f32.mrf.mxu1 }
 0x11f   : > { %v576_v22 = vadd.f32 %v575_v16, %v2135_v11 }
 0x121   : > { %v653_v24 = vmax.f32 %v576_v22, 0.0  ;;  %v531_v39 = vpop.f32.mrf.mxu3 }
 0x123   : > { %v709_v27 = vpack.c.bf16 %v653_v24, %v651_v23 }
 0x125   : > { %914 = vmatmul.bf16.gmra.mxu2 %v718_v40  ;;  %978 = vmatmul.bf16.gmra.mxu3 %v709_v27  ;;  %v520_v40 = vadd.f32 %v519_v10, %v2062_v31  ;;  %v532_v10 = vadd.f32 %v531_v39, %v2062_v31 }
 0x126   : > { %v578_v29 = vpop.f32.mrf.mxu1 }
 0x127   : > { %v579_v33 = vadd.f32 %v578_v29, %v2135_v11  ;;  %v678_v42 = vmax.f32 %v520_v40, 0.0  ;;  %v688_v18 = vmax.f32 %v532_v10, 0.0 }
 0x129   : > { %1515 = vmatmul.msk.bf16.gmra.mxu1 %vm411_vm0, %v2049_v26  ;;  %v655_v36 = vmax.f32 %v579_v33, 0.0  ;;  %v2163_v26 = vpop.f32.mrf.mxu2  ;;  %v534_v47 = vpop.f32.mrf.mxu3  ;;  %v722_v53 = vpack.c.bf16 %v680_v43, %v678_v42  ;;  %v726_v22 = vpack.c.bf16 %v688_v18, %v686_v17  ;;  %v2211_v43 = vld [vmem:[%s2388_s4] ss:$0 sm:$0xff] }
 0x12a   : > { %v535_v29 = vadd.f32 %v534_v47, %v2062_v31 }
 0x12c   : > { %v690_v33 = vmax.f32 %v535_v29, 0.0 }
 0x12e   : > { %v580_v34 = vpop.f32.mrf.mxu1 }
 0x12f   : > { %v581_v35 = vadd.f32 %v580_v34, %v2135_v11 }
 0x131   : > { %v657_v37 = vmax.f32 %v581_v35, 0.0  ;;  %v2171_v50 = vpop.f32.mrf.mxu2 }
 0x133   : > { %v711_v38 = vpack.c.bf16 %v657_v37, %v655_v36 }
 0x135   : > { %919 = vmatmul.bf16.gmra.mxu2 %v720_v56  ;;  %983 = vmatmul.bf16.gmra.mxu3 %v711_v38  ;;  %v536_v56 = vpop.f32.mrf.mxu3 }
 0x136   : > { %v583_v9 = vpop.f32.mrf.mxu1  ;;  %v537_v21 = vadd.f32 %v536_v56, %v2062_v31 }
 0x137   : > { %v584_v44 = vadd.f32 %v583_v9, %v2135_v11 }
 0x138   : > { %v692_v34 = vmax.f32 %v537_v21, 0.0 }
 0x139   : > { %1516 = vmatmul.msk.bf16.gmra.mxu1 %vm411_vm0, %v2066_v32  ;;  %v659_v51 = vmax.f32 %v584_v44, 0.0  ;;  %v2180_v59 = vpop.f32.mrf.mxu2 }
 0x13a   : > { %v728_v40 = vpack.c.bf16 %v692_v34, %v690_v33 }
 0x13d   : > { %v539_v4 = vpop.f32.mrf.mxu3 }
 0x13e   : > { %v585_v46 = vpop.f32.mrf.mxu1  ;;  %v540_v44 = vadd.f32 %v539_v4, %v2062_v31 }
 0x13f   : > { %v586_v48 = vadd.f32 %v585_v46, %v2135_v11 }
 0x140   : > { %v694_v54 = vmax.f32 %v540_v44, 0.0 }
 0x141   : > { %v661_v52 = vmax.f32 %v586_v48, 0.0  ;;  %v2184_v6 = vpop.f32.mrf.mxu2  ;;  %v876_v48 = vadd.f32 %v2211_v43, %v2163_v26 }
 0x142   : > { %v883_v45 = vadd.f32 %v2211_v43, %v2184_v6 }
 0x143   : > { %v713_v55 = vpack.c.bf16 %v661_v52, %v659_v51  ;;  %v878_v52 = vadd.f32 %v2211_v43, %v2171_v50 }
 0x145   : > { %924 = vmatmul.bf16.gmra.mxu2 %v722_v53  ;;  %988 = vmatmul.bf16.gmra.mxu3 %v713_v55  ;;  %v541_v12 = vpop.f32.mrf.mxu3 }
 0x146   : > { %v588_v32 = vpop.f32.mrf.mxu1  ;;  %v542_v46 = vadd.f32 %v541_v12, %v2062_v31 }
 0x147   : > { %v589_v63 = vadd.f32 %v588_v32, %v2135_v11 }
 0x148   : > { %v696_v55 = vmax.f32 %v542_v46, 0.0 }
 0x149   : > { %1517 = vmatmul.msk.bf16.gmra.mxu1 %vm411_vm0, %v2084_v49  ;;  %v663_v28 = vmax.f32 %v589_v63, 0.0  ;;  %v1655_v49 = vld [vmem:[%s2389_s5 + $0x8] sm:$0xff]  ;;  %v2194_v7 = vpop.f32.mrf.mxu2 }
 0x14a   : > { %1183 = vmatpush.bf16.msrb.mxu0 %v1655_v49  ;;  %1759 = vmatpush.bf16.msra.mxu2 %v1655_v49  ;;  %v881_v49 = vadd.f32 %v2211_v43, %v2180_v59  ;;  %v886_v21 = vadd.f32 %v2211_v43, %v2194_v7 }
 0x14d   : > { %v544_v24 = vpop.f32.mrf.mxu3 }
 0x14e   : > { %v590_v0 = vpop.f32.mrf.mxu1  ;;  %v545_v4 = vadd.f32 %v544_v24, %v2062_v31 }
 0x14f   : > { %v591_v1 = vadd.f32 %v590_v0, %v2135_v11 }
 0x150   : > { %v698_v12 = vmax.f32 %v545_v4, 0.0 }
 0x151   : > { %v665_v3 = vmax.f32 %v591_v1, 0.0  ;;  %v2200_v27 = vpop.f32.mrf.mxu2 }
 0x152   : > { %v888_v33 = vadd.f32 %v2211_v43, %v2200_v27 }
 0x153   : > { %v715_v5 = vpack.c.bf16 %v665_v3, %v663_v28  ;;  %v730_v28 = vpack.c.bf16 %v696_v55, %v694_v54 }
 0x155   : > { %929 = vmatmul.bf16.gmra.mxu2 %v724_v13  ;;  %993 = vmatmul.bf16.gmra.mxu3 %v715_v5  ;;  %v546_v36 = vpop.f32.mrf.mxu3 }
 0x156   : > { %v593_v8 = vpop.f32.mrf.mxu1  ;;  %v547_v5 = vadd.f32 %v546_v36, %v2062_v31 }
 0x157   : > { %v594_v15 = vadd.f32 %v593_v8, %v2135_v11 }
 0x159   : > { %1518 = vmatmul.msk.bf16.gmra.mxu1 %vm411_vm0, %v2103_v2  ;;  %v667_v62 = vmax.f32 %v594_v15, 0.0  ;;  %v1654_v2 = vld [vmem:[%s2389_s5] sm:$0xff]  ;;  %v2206_v39 = vpop.f32.mrf.mxu2  ;;  %v700_v15 = vmax.f32 %v547_v5, 0.0 }
 0x15a   : > { %1184 = vmatpush.bf16.msrb.mxu0 %v1654_v2  ;;  %1760 = vmatpush.bf16.msra.mxu2 %v1654_v2  ;;  %v891_v27 = vadd.f32 %v2211_v43, %v2206_v39 }
 0x15b   : > { %v732_v59 = vpack.c.bf16 %v700_v15, %v698_v12 }
 0x15e   : > { %v595_v14 = vpop.f32.mrf.mxu1 }
 0x15f   : > { %v596_v20 = vadd.f32 %v595_v14, %v2135_v11 }
 0x161   : > { %v669_v16 = vmax.f32 %v596_v20, 0.0  ;;  %v2215_v47 = vpop.f32.mrf.mxu2 }
 0x162   : > { %v893_v54 = vadd.f32 %v2211_v43, %v2215_v47 }
 0x163   : > { %v717_v23 = vpack.c.bf16 %v669_v16, %v667_v62 }
 0x165   : > { %934 = vmatmul.bf16.gmra.mxu2 %v726_v22  ;;  %998 = vmatmul.bf16.gmra.mxu3 %v717_v23 }
 0x166   : > { %v598_v25 = vpop.f32.mrf.mxu1 }
 0x167   : > { %v599_v19 = vadd.f32 %v598_v25, %v2135_v11 }
 0x169   : > { %v671_v37 = vmax.f32 %v599_v19, 0.0  ;;  %v2223_v3 = vpop.f32.mrf.mxu2 }
 0x16a   : > { %v896_v47 = vadd.f32 %v2211_v43, %v2223_v3 }
 0x16e   : > { %v600_v30 = vpop.f32.mrf.mxu1 }
 0x16f   : > { %v601_v35 = vadd.f32 %v600_v30, %v2135_v11 }
 0x171   : > { %v673_v38 = vmax.f32 %v601_v35, 0.0  ;;  %v897_v18 = vpop.f32.mrf.mxu2 }
 0x172   : > { %v898_v4 = vadd.f32 %v2211_v43, %v897_v18 }
 0x173   : > { %v719_v9 = vpack.c.bf16 %v673_v38, %v671_v37 }
 0x175   : > { %939 = vmatmul.bf16.gmra.mxu2 %v728_v40  ;;  %1003 = vmatmul.bf16.gmra.mxu3 %v719_v9 }
 0x176   : > { %v603_v41 = vpop.f32.mrf.mxu1 }
 0x177   : > { %v604_v51 = vadd.f32 %v603_v41, %v2135_v11 }
 0x178   : > { %v964_v42 = vpop.f32.mrf.mxu3 }
 0x179   : > { %v965_v32 = vadd.f32 %v964_v42, %v876_v48  ;;  %v675_v58 = vmax.f32 %v604_v51, 0.0  ;;  %v900_v29 = vpop.f32.mrf.mxu2 }
 0x17a   : > { %v901_v18 = vadd.f32 %v2211_v43, %v900_v29 }
 0x17b   : > { %v1044_v63 = vmax.f32 %v965_v32, 0.0 }
 0x17e   : > { %v605_v53 = vpop.f32.mrf.mxu1 }
 0x17f   : > { %v606_v56 = vadd.f32 %v605_v53, %v2135_v11 }
 0x180   : > { %v966_v57 = vpop.f32.mrf.mxu3 }
 0x181   : > { %v677_v60 = vmax.f32 %v606_v56, 0.0  ;;  %v967_v61 = vadd.f32 %v966_v57, %v878_v52  ;;  %v902_v44 = vpop.f32.mrf.mxu2 }
 0x183   : > { %v721_v0 = vpack.c.bf16 %v677_v60, %v675_v58  ;;  %v1045_v1 = vmax.f32 %v967_v61, 0.0 }
 0x185   : > { %v1076_v26 = vpack.c.bf16 %v1045_v1, %v1044_v63  ;;  %944 = vmatmul.bf16.gmra.mxu2 %v730_v28  ;;  %1008 = vmatmul.bf16.gmra.mxu3 %v721_v0 }
 0x186   : > { %v608_v50 = vpop.f32.mrf.mxu1 }
 0x187   : > { %1599 = vmatmul.msk.bf16.vlgmr.msrb.gmra.mxu0 %vm1128_vm1, %v1076_v26  ;;  %v609_v8 = vadd.f32 %v608_v50, %v2135_v11 }
 0x188   : > { %v969_v13 = vpop.f32.mrf.mxu3 }
 0x189   : > { %v970_v14 = vadd.f32 %v969_v13, %v881_v49  ;;  %v679_v62 = vmax.f32 %v609_v8, 0.0  ;;  %v905_v52 = vpop.f32.mrf.mxu2 }
 0x18b   : > { %v1046_v31 = vmax.f32 %v970_v14, 0.0 }
 0x18e   : > { %v610_v10 = vpop.f32.mrf.mxu1 }
 0x18f   : > { %v611_v17 = vadd.f32 %v610_v10, %v2135_v11 }
 0x190   : > { %v971_v20 = vpop.f32.mrf.mxu3 }
 0x191   : > { %v681_v16 = vmax.f32 %v611_v17, 0.0  ;;  %v972_v2 = vadd.f32 %v971_v20, %v883_v45  ;;  %v907_v28 = vpop.f32.mrf.mxu2 }
 0x193   : > { %v723_v22 = vpack.c.bf16 %v681_v16, %v679_v62  ;;  %v1047_v23 = vmax.f32 %v972_v2, 0.0 }
 0x195   : > { %949 = vmatmul.bf16.gmra.mxu2 %v732_v59  ;;  %1013 = vmatmul.bf16.gmra.mxu3 %v723_v22  ;;  %v1077_v24 = vpack.c.bf16 %v1047_v23, %v1046_v31  ;;  %v903_v23 = vadd.f32 %v2211_v43, %v902_v44 }
 0x196   : > { %v613_v25 = vpop.f32.mrf.mxu1 }
 0x197   : > { %1600 = vmatmul.msk.bf16.gmra.mxu0 %vm1128_vm1, %v1077_v24  ;;  %v614_v19 = vadd.f32 %v613_v25, %v2135_v11 }
 0x198   : > { %v974_v6 = vpop.f32.mrf.mxu3 }
 0x199   : > { %v975_v34 = vadd.f32 %v974_v6, %v886_v21  ;;  %v683_v37 = vmax.f32 %v614_v19, 0.0  ;;  %v910_v15 = vpop.f32.mrf.mxu2 }
 0x19b   : > { %v1048_v40 = vmax.f32 %v975_v34, 0.0 }
 0x19e   : > { %v615_v30 = vpop.f32.mrf.mxu1 }
 0x19f   : > { %v616_v35 = vadd.f32 %v615_v30, %v2135_v11 }
 0x1a0   : > { %v976_v36 = vpop.f32.mrf.mxu3 }
 0x1a1   : > { %v685_v38 = vmax.f32 %v616_v35, 0.0  ;;  %v977_v9 = vadd.f32 %v976_v36, %v888_v33  ;;  %v912_v2 = vpop.f32.mrf.mxu2 }
 0x1a3   : > { %v725_v41 = vpack.c.bf16 %v685_v38, %v683_v37  ;;  %v1049_v42 = vmax.f32 %v977_v9, 0.0  ;;  %v906_v38 = vadd.f32 %v2211_v43, %v905_v52 }
 0x1a5   : > { %1018 = vmatmul.bf16.gmra.mxu3 %v725_v41  ;;  %v1078_v46 = vpack.c.bf16 %v1049_v42, %v1048_v40  ;;  %v908_v41 = vadd.f32 %v2211_v43, %v907_v28 }
 0x1a6   : > { %v618_v7 = vpop.f32.mrf.mxu1 }
 0x1a7   : > { %1601 = vmatmul.msk.bf16.gmra.mxu0 %vm1128_vm1, %v1078_v46  ;;  %v619_v51 = vadd.f32 %v618_v7, %v2135_v11 }
 0x1a8   : > { %v979_v48 = vpop.f32.mrf.mxu3 }
 0x1a9   : > { %v980_v55 = vadd.f32 %v979_v48, %v891_v27  ;;  %v687_v57 = vmax.f32 %v619_v51, 0.0  ;;  %v915_v36 = vpop.f32.mrf.mxu2 }
 0x1ab   : > { %v1050_v61 = vmax.f32 %v980_v55, 0.0 }
 0x1ae   : > { %v620_v53 = vpop.f32.mrf.mxu1 }
 0x1af   : > { %v621_v32 = vadd.f32 %v620_v53, %v2135_v11 }
 0x1b0   : > { %v981_v56 = vpop.f32.mrf.mxu3 }
 0x1b1   : > { %v689_v58 = vmax.f32 %v621_v32, 0.0  ;;  %v982_v60 = vadd.f32 %v981_v56, %v893_v54  ;;  %v917_v46 = vpop.f32.mrf.mxu2 }
 0x1b3   : > { %v727_v63 = vpack.c.bf16 %v689_v58, %v687_v57  ;;  %v1051_v0 = vmax.f32 %v982_v60, 0.0  ;;  %v911_v57 = vadd.f32 %v2211_v43, %v910_v15  ;;  %v913_v58 = vadd.f32 %v2211_v43, %v912_v2 }
 0x1b5   : > { %1023 = vmatmul.bf16.gmra.mxu3 %v727_v63  ;;  %v1079_v1 = vpack.c.bf16 %v1051_v0, %v1050_v61 }
 0x1b6   : > { %v623_v39 = vpop.f32.mrf.mxu1 }
 0x1b7   : > { %1602 = vmatmul.msk.bf16.gmra.mxu0 %vm1128_vm1, %v1079_v1  ;;  %v624_v50 = vadd.f32 %v623_v39, %v2135_v11 }
 0x1b8   : > { %v984_v26 = vpop.f32.mrf.mxu3 }
 0x1b9   : > { %v985_v5 = vadd.f32 %v984_v26, %v896_v47  ;;  %v691_v45 = vmax.f32 %v624_v50, 0.0  ;;  %v920_v56 = vpop.f32.mrf.mxu2  ;;  %v916_v26 = vadd.f32 %v2211_v43, %v915_v36  ;;  %v918_v50 = vadd.f32 %v2211_v43, %v917_v46 }
 0x1bb   : > { %v1052_v14 = vmax.f32 %v985_v5, 0.0 }
 0x1be   : > { %v625_v13 = vpop.f32.mrf.mxu1 }
 0x1bf   : > { %v626_v49 = vadd.f32 %v625_v13, %v2135_v11 }
 0x1c0   : > { %v986_v8 = vpop.f32.mrf.mxu3 }
 0x1c1   : > { %v693_v10 = vmax.f32 %v626_v49, 0.0  ;;  %v987_v12 = vadd.f32 %v986_v8, %v898_v4  ;;  %v922_v1 = vpop.f32.mrf.mxu2 }
 0x1c3   : > { %v729_v17 = vpack.c.bf16 %v693_v10, %v691_v45  ;;  %v1053_v20 = vmax.f32 %v987_v12, 0.0 }
 0x1c5   : > { %v1080_v62 = vpack.c.bf16 %v1053_v20, %v1052_v14  ;;  %1028 = vmatmul.bf16.gmra.mxu3 %v729_v17  ;;  %v2275_v14 = vld [vmem:[%s2390_s6] ss:$0 sm:$0xff]  ;;  %v921_v20 = vadd.f32 %v2211_v43, %v920_v56 }
 0x1c6   : > { %v628_v16 = vpop.f32.mrf.mxu1 }
 0x1c7   : > { %1603 = vmatmul.msk.bf16.gmra.mxu0 %vm1128_vm1, %v1080_v62  ;;  %v629_v31 = vadd.f32 %v628_v16, %v2135_v11 }
 0x1c8   : > { %v989_v3 = vpop.f32.mrf.mxu3 }
 0x1c9   : > { %v990_v59 = vadd.f32 %v989_v3, %v901_v18  ;;  %v695_v6 = vmax.f32 %v629_v31, 0.0  ;;  %v925_v47 = vpop.f32.mrf.mxu2  ;;  %v923_v3 = vadd.f32 %v2211_v43, %v922_v1 }
 0x1cb   : > { %v1054_v30 = vmax.f32 %v990_v59, 0.0 }
 0x1ce   : > { %v630_v22 = vpop.f32.mrf.mxu1 }
 0x1cf   : > { %v631_v24 = vadd.f32 %v630_v22, %v2135_v11 }
 0x1d0   : > { %v991_v25 = vpop.f32.mrf.mxu3 }
 0x1d1   : > { %v697_v21 = vmax.f32 %v631_v24, 0.0  ;;  %v992_v19 = vadd.f32 %v991_v25, %v903_v23  ;;  %v927_v12 = vpop.f32.mrf.mxu2 }
 0x1d2   : > { %v928_v36 = vadd.f32 %v2211_v43, %v927_v12 }
 0x1d3   : > { %v731_v33 = vpack.c.bf16 %v697_v21, %v695_v6  ;;  %v1055_v34 = vmax.f32 %v992_v19, 0.0 }
 0x1d5   : > { %v1081_v35 = vpack.c.bf16 %v1055_v34, %v1054_v30  ;;  %1033 = vmatmul.bf16.gmra.mxu3 %v731_v33  ;;  %v926_v33 = vadd.f32 %v2211_v43, %v925_v47 }
 0x1d6   : > { %v633_v37 = vpop.f32.mrf.mxu1 }
 0x1d7   : > { %1604 = vmatmul.msk.bf16.gmra.mxu0 %vm1128_vm1, %v1081_v35  ;;  %v634_v9 = vadd.f32 %v633_v37, %v2135_v11 }
 0x1d8   : > { %v994_v29 = vpop.f32.mrf.mxu3 }
 0x1d9   : > { %v995_v42 = vadd.f32 %v994_v29, %v906_v38  ;;  %v699_v48 = vmax.f32 %v634_v9, 0.0  ;;  %v930_v23 = vpop.f32.mrf.mxu2 }
 0x1db   : > { %v1056_v53 = vmax.f32 %v995_v42, 0.0 }
 0x1de   : > { %v635_v40 = vpop.f32.mrf.mxu1 }
 0x1df   : > { %v636_v44 = vadd.f32 %v635_v40, %v2135_v11 }
 0x1e0   : > { %v996_v7 = vpop.f32.mrf.mxu3 }
 0x1e1   : > { %v701_v27 = vmax.f32 %v636_v44, 0.0  ;;  %v997_v51 = vadd.f32 %v996_v7, %v908_v41  ;;  %v932_v19 = vpop.f32.mrf.mxu2 }
 0x1e3   : > { %v733_v54 = vpack.c.bf16 %v701_v27, %v699_v48  ;;  %v1057_v55 = vmax.f32 %v997_v51, 0.0  ;;  %v931_v27 = vadd.f32 %v2211_v43, %v930_v23 }
 0x1e5   : > { %v1082_v32 = vpack.c.bf16 %v1057_v55, %v1056_v53  ;;  %1038 = vmatmul.bf16.gmra.mxu3 %v733_v54  ;;  %v933_v54 = vadd.f32 %v2211_v43, %v932_v19 }
 0x1e7   : > { %1605 = vmatmul.msk.bf16.gmra.mxu0 %vm1128_vm1, %v1082_v32 }
 0x1e8   : > { %v999_v52 = vpop.f32.mrf.mxu3 }
 0x1e9   : > { %v1000_v60 = vadd.f32 %v999_v52, %v911_v57  ;;  %v935_v46 = vpop.f32.mrf.mxu2 }
 0x1eb   : > { %v1058_v63 = vmax.f32 %v1000_v60, 0.0 }
 0x1f0   : > { %v1001_v11 = vpop.f32.mrf.mxu3 }
 0x1f1   : > { %v1002_v61 = vadd.f32 %v1001_v11, %v913_v58  ;;  %v937_v52 = vpop.f32.mrf.mxu2 }
 0x1f2   : > { %v938_v47 = vadd.f32 %v2211_v43, %v937_v52 }
 0x1f3   : > { %v1059_v0 = vmax.f32 %v1002_v61, 0.0 }
 0x1f5   : > { %v1083_v39 = vpack.c.bf16 %v1059_v0, %v1058_v63 }
 0x1f7   : > { %1606 = vmatmul.msk.bf16.gmra.mxu0 %vm1128_vm1, %v1083_v39  ;;  %v936_v39 = vadd.f32 %v2211_v43, %v935_v46 }
 0x1f8   : > { %v1004_v28 = vpop.f32.mrf.mxu3 }
 0x1f9   : > { %v1005_v13 = vadd.f32 %v1004_v28, %v916_v26  ;;  %v940_v0 = vpop.f32.mrf.mxu2 }
 0x1fb   : > { %v1060_v49 = vmax.f32 %v1005_v13, 0.0 }
 0x200   : > { %v1006_v4 = vpop.f32.mrf.mxu3 }
 0x201   : > { %v1007_v5 = vadd.f32 %v1006_v4, %v918_v50 }
 0x203   : > { %v1061_v8 = vmax.f32 %v1007_v5, 0.0 }
 0x204   : > { %v1186_v45 = vpop.f32.mrf.mxu0 }
 0x205   : > { %v1084_v10 = vpack.c.bf16 %v1061_v8, %v1060_v49  ;;  %v1187_v62 = vadd.f32 %v2275_v14, %v1186_v45  ;;  %v942_v45 = vpop.f32.mrf.mxu2 }
 0x207   : > { %1607 = vmatmul.msk.bf16.gmra.mxu0 %vm1128_vm1, %v1084_v10 }
 0x208   : > { %v1009_v15 = vpop.f32.mrf.mxu3 }
 0x209   : > { %v1010_v2 = vadd.f32 %v1009_v15, %v921_v20  ;;  %v941_v20 = vadd.f32 %v2211_v43, %v940_v0 }
 0x20b   : > { %v1062_v59 = vmax.f32 %v1010_v2, 0.0  ;;  %v943_v2 = vadd.f32 %v2211_v43, %v942_v45 }
 0x20c   : > { %v1188_v17 = vpop.f32.mrf.mxu0 }
 0x20d   : > { %v1189_v16 = vadd.f32 %v2275_v14, %v1188_v17 }
 0x20f   : > { %v1662_v18 = vpack.c.bf16 %v1189_v16, %v1187_v62 }
 0x210   : > { %v1011_v31 = vpop.f32.mrf.mxu3 }
 0x211   : > { %1663 = vst [vmem:[%s2283_s19] sm:$0xff] %v1662_v18   ;;  %v1012_v22 = vadd.f32 %v1011_v31, %v923_v3  ;;  %v945_v3 = vpop.f32.mrf.mxu2 }
 0x213   : > { %v1063_v24 = vmax.f32 %v1012_v22, 0.0 }
 0x214   : > { %v1191_v25 = vpop.f32.mrf.mxu0 }
 0x215   : > { %v1085_v6 = vpack.c.bf16 %v1063_v24, %v1062_v59  ;;  %v1192_v34 = vadd.f32 %v2275_v14, %v1191_v25 }
 0x217   : > { %1608 = vmatmul.msk.bf16.gmra.mxu0 %vm1128_vm1, %v1085_v6 }
 0x218   : > { %v1014_v21 = vpop.f32.mrf.mxu3 }
 0x219   : > { %v1015_v37 = vadd.f32 %v1014_v21, %v926_v33  ;;  %v947_v21 = vpop.f32.mrf.mxu2  ;;  %v946_v33 = vadd.f32 %v2211_v43, %v945_v3 }
 0x21b   : > { %v1064_v40 = vmax.f32 %v1015_v37, 0.0 }
 0x21c   : > { %v1193_v30 = vpop.f32.mrf.mxu0 }
 0x21d   : > { %v1194_v35 = vadd.f32 %v2275_v14, %v1193_v30 }
 0x21f   : > { %v1667_v29 = vpack.c.bf16 %v1194_v35, %v1192_v34 }
 0x220   : > { %v1016_v38 = vpop.f32.mrf.mxu3 }
 0x221   : > { %1739 = vst [vmem:[%s2283_s19 + $0x8] sm:$0xff] %v1667_v29   ;;  %v1017_v9 = vadd.f32 %v1016_v38, %v928_v36  ;;  %v948_v36 = vadd.f32 %v2211_v43, %v947_v21 }
 0x223   : > { %v1065_v41 = vmax.f32 %v1017_v9, 0.0 }
 0x224   : > { %v1196_v42 = vpop.f32.mrf.mxu0 }
 0x225   : > { %v1086_v44 = vpack.c.bf16 %v1065_v41, %v1064_v40  ;;  %v1197_v51 = vadd.f32 %v2275_v14, %v1196_v42  ;;  %v950_v40 = vpop.f32.mrf.mxu2 }
 0x227   : > { %1609 = vmatmul.msk.bf16.gmra.mxu0 %vm1128_vm1, %v1086_v44 }
 0x228   : > { %v1019_v7 = vpop.f32.mrf.mxu3 }
 0x229   : > { %v1020_v55 = vadd.f32 %v1019_v7, %v931_v27 }
 0x22b   : > { %v1066_v58 = vmax.f32 %v1020_v55, 0.0 }
 0x22c   : > { %v1198_v48 = vpop.f32.mrf.mxu0 }
 0x22d   : > { %v1199_v53 = vadd.f32 %v2275_v14, %v1198_v48  ;;  %v952_v48 = vpop.f32.mrf.mxu2 }
 0x22e   : > { %v953_v55 = vadd.f32 %v2211_v43, %v952_v48 }
 0x22f   : > { %v1672_v32 = vpack.c.bf16 %v1199_v53, %v1197_v51  ;;  %v951_v51 = vadd.f32 %v2211_v43, %v950_v40 }
 0x230   : > { %v1021_v56 = vpop.f32.mrf.mxu3 }
 0x231   : > { %1740 = vst [vmem:[%s2283_s19 + $0x10] sm:$0xff] %v1672_v32   ;;  %v1022_v57 = vadd.f32 %v1021_v56, %v933_v54 }
 0x233   : > { %v1067_v60 = vmax.f32 %v1022_v57, 0.0 }
 0x234   : > { %v1201_v11 = vpop.f32.mrf.mxu0 }
 0x235   : > { %v1087_v61 = vpack.c.bf16 %v1067_v60, %v1066_v58  ;;  %v1202_v28 = vadd.f32 %v2275_v14, %v1201_v11 }
 0x237   : > { %1610 = vmatmul.msk.bf16.gmra.mxu0 %vm1128_vm1, %v1087_v61 }
 0x238   : > { %v1024_v63 = vpop.f32.mrf.mxu3 }
 0x239   : > { %v1025_v50 = vadd.f32 %v1024_v63, %v936_v39 }
 0x23b   : > { %v1068_v49 = vmax.f32 %v1025_v50, 0.0 }
 0x23c   : > { %v1203_v1 = vpop.f32.mrf.mxu0 }
 0x23d   : > { %v1204_v26 = vadd.f32 %v2275_v14, %v1203_v1 }
 0x23f   : > { %v1677_v13 = vpack.c.bf16 %v1204_v26, %v1202_v28 }
 0x240   : > { %v1026_v4 = vpop.f32.mrf.mxu3 }
 0x241   : > { %1741 = vst [vmem:[%s2283_s19 + $0x18] sm:$0xff] %v1677_v13   ;;  %v1027_v5 = vadd.f32 %v1026_v4, %v938_v47 }
 0x243   : > { %v1069_v8 = vmax.f32 %v1027_v5, 0.0 }
 0x244   : > { %v1206_v10 = vpop.f32.mrf.mxu0 }
 0x245   : > { %v1088_v12 = vpack.c.bf16 %v1069_v8, %v1068_v49  ;;  %v1207_v62 = vadd.f32 %v2275_v14, %v1206_v10 }
 0x247   : > { %1611 = vmatmul.msk.bf16.gmra.mxu0 %vm1128_vm1, %v1088_v12 }
 0x248   : > { %v1029_v15 = vpop.f32.mrf.mxu3 }
 0x249   : > { %v1030_v18 = vadd.f32 %v1029_v15, %v941_v20 }
 0x24b   : > { %v1070_v59 = vmax.f32 %v1030_v18, 0.0 }
 0x24c   : > { %v1208_v17 = vpop.f32.mrf.mxu0 }
 0x24d   : > { %v1209_v16 = vadd.f32 %v2275_v14, %v1208_v17 }
 0x24f   : > { %v1682_v31 = vpack.c.bf16 %v1209_v16, %v1207_v62 }
 0x250   : > { %v1031_v22 = vpop.f32.mrf.mxu3 }
 0x251   : > { %1742 = vst [vmem:[%s2283_s19 + $0x20] sm:$0xff] %v1682_v31   ;;  %v1032_v23 = vadd.f32 %v1031_v22, %v943_v2 }
 0x253   : > { %v1071_v24 = vmax.f32 %v1032_v23, 0.0 }
 0x254   : > { %v1211_v25 = vpop.f32.mrf.mxu0 }
 0x255   : > { %v1089_v6 = vpack.c.bf16 %v1071_v24, %v1070_v59  ;;  %v1212_v34 = vadd.f32 %v2275_v14, %v1211_v25 }
 0x257   : > { %1612 = vmatmul.msk.bf16.gmra.mxu0 %vm1128_vm1, %v1089_v6 }
 0x258   : > { %v1034_v19 = vpop.f32.mrf.mxu3 }
 0x259   : > { %v1035_v37 = vadd.f32 %v1034_v19, %v946_v33 }
 0x25b   : > { %v1072_v41 = vmax.f32 %v1035_v37, 0.0 }
 0x25c   : > { %v1213_v30 = vpop.f32.mrf.mxu0 }
 0x25d   : > { %v1214_v35 = vadd.f32 %v2275_v14, %v1213_v30 }
 0x25f   : > { %v1687_v29 = vpack.c.bf16 %v1214_v35, %v1212_v34 }
 0x260   : > { %v1036_v38 = vpop.f32.mrf.mxu3 }
 0x261   : > { %1743 = vst [vmem:[%s2283_s19 + $0x28] sm:$0xff] %v1687_v29   ;;  %v1037_v9 = vadd.f32 %v1036_v38, %v948_v36 }
 0x263   : > { %v1073_v42 = vmax.f32 %v1037_v9, 0.0 }
 0x264   : > { %v1216_v44 = vpop.f32.mrf.mxu0 }
 0x265   : > { %v1090_v46 = vpack.c.bf16 %v1073_v42, %v1072_v41  ;;  %v1217_v53 = vadd.f32 %v2275_v14, %v1216_v44 }
 0x267   : > { %1613 = vmatmul.msk.bf16.gmra.mxu0 %vm1128_vm1, %v1090_v46 }
 0x268   : > { %v1039_v7 = vpop.f32.mrf.mxu3 }
 0x269   : > { %v1040_v32 = vadd.f32 %v1039_v7, %v951_v51 }
 0x26b   : > { %v1074_v58 = vmax.f32 %v1040_v32, 0.0 }
 0x26c   : > { %v1218_v27 = vpop.f32.mrf.mxu0 }
 0x26d   : > { %v1219_v54 = vadd.f32 %v2275_v14, %v1218_v27 }
 0x26f   : > { %v1692_v52 = vpack.c.bf16 %v1219_v54, %v1217_v53 }
 0x270   : > { %v1041_v56 = vpop.f32.mrf.mxu3 }
 0x271   : > { %1744 = vst [vmem:[%s2283_s19 + $0x30] sm:$0xff] %v1692_v52   ;;  %v1042_v57 = vadd.f32 %v1041_v56, %v953_v55 }
 0x273   : > { %v1075_v60 = vmax.f32 %v1042_v57, 0.0 }
 0x274   : > { %v1221_v11 = vpop.f32.mrf.mxu0 }
 0x275   : > { %v1091_v61 = vpack.c.bf16 %v1075_v60, %v1074_v58  ;;  %v1222_v0 = vadd.f32 %v2275_v14, %v1221_v11 }
 0x277   : > { %1614 = vmatmul.msk.bf16.vlgmr.msra.gmra.mxu2 %vm1128_vm1, %v1091_v61 }
 0x27c   : > { %v1223_v63 = vpop.f32.mrf.mxu0 }
 0x27d   : > { %v1224_v1 = vadd.f32 %v2275_v14, %v1223_v63 }
 0x27f   : > { %v1697_v39 = vpack.c.bf16 %v1224_v1, %v1222_v0 }
 0x281   : > { %1745 = vst [vmem:[%s2283_s19 + $0x38] sm:$0xff] %v1697_v39  }
 0x284   : > { %v1226_v43 = vpop.f32.mrf.mxu0 }
 0x285   : > { %v1227_v26 = vadd.f32 %v2275_v14, %v1226_v43 }
 0x28c   : > { %v1228_v28 = vpop.f32.mrf.mxu0 }
 0x28d   : > { %v1229_v47 = vadd.f32 %v2275_v14, %v1228_v28 }
 0x28f   : > { %v1702_v50 = vpack.c.bf16 %v1229_v47, %v1227_v26 }
 0x291   : > { %1746 = vst [vmem:[%s2283_s19 + $0x40] sm:$0xff] %v1702_v50  }
 0x294   : > { %v1231_v13 = vpop.f32.mrf.mxu0 }
 0x295   : > { %v1232_v5 = vadd.f32 %v2275_v14, %v1231_v13 }
 0x29c   : > { %v1233_v4 = vpop.f32.mrf.mxu0 }
 0x29d   : > { %v1234_v49 = vadd.f32 %v2275_v14, %v1233_v4 }
 0x29f   : > { %v1707_v8 = vpack.c.bf16 %v1234_v49, %v1232_v5 }
 0x2a1   : > { %1747 = vst [vmem:[%s2283_s19 + $0x48] sm:$0xff] %v1707_v8  }
 0x2a4   : > { %v1236_v45 = vpop.f32.mrf.mxu0 }
 0x2a5   : > { %v1237_v12 = vadd.f32 %v2275_v14, %v1236_v45 }
 0x2ac   : > { %v1238_v10 = vpop.f32.mrf.mxu0 }
 0x2ad   : > { %v1239_v15 = vadd.f32 %v2275_v14, %v1238_v10 }
 0x2af   : > { %v1712_v17 = vpack.c.bf16 %v1239_v15, %v1237_v12 }
 0x2b1   : > { %1748 = vst [vmem:[%s2283_s19 + $0x50] sm:$0xff] %v1712_v17  }
 0x2b4   : > { %v1241_v20 = vpop.f32.mrf.mxu0 }
 0x2b5   : > { %v1242_v16 = vadd.f32 %v2275_v14, %v1241_v20 }
 0x2bc   : > { %v1243_v62 = vpop.f32.mrf.mxu0 }
 0x2bd   : > { %v1244_v3 = vadd.f32 %v2275_v14, %v1243_v62 }
 0x2bf   : > { %v1717_v2 = vpack.c.bf16 %v1244_v3, %v1242_v16 }
 0x2c1   : > { %1749 = vst [vmem:[%s2283_s19 + $0x58] sm:$0xff] %v1717_v2  }
 0x2c4   : > { %v1246_v18 = vpop.f32.mrf.mxu0 }
 0x2c5   : > { %v1247_v22 = vadd.f32 %v2275_v14, %v1246_v18 }
 0x2cc   : > { %v1248_v31 = vpop.f32.mrf.mxu0 }
 0x2cd   : > { %v1249_v23 = vadd.f32 %v2275_v14, %v1248_v31 }
 0x2cf   : > { %v1722_v59 = vpack.c.bf16 %v1249_v23, %v1247_v22 }
 0x2d1   : > { %1750 = vst [vmem:[%s2283_s19 + $0x60] sm:$0xff] %v1722_v59  }
 0x2d4   : > { %v1251_v24 = vpop.f32.mrf.mxu0 }
 0x2d5   : > { %v1252_v6 = vadd.f32 %v2275_v14, %v1251_v24 }
 0x2dc   : > { %v1253_v25 = vpop.f32.mrf.mxu0 }
 0x2dd   : > { %v1254_v21 = vadd.f32 %v2275_v14, %v1253_v25 }
 0x2df   : > { %v1727_v19 = vpack.c.bf16 %v1254_v21, %v1252_v6 }
 0x2e1   : > { %1751 = vst [vmem:[%s2283_s19 + $0x68] sm:$0xff] %v1727_v19  }
 0x2e4   : > { %v1256_v30 = vpop.f32.mrf.mxu0 }
 0x2e5   : > { %v1257_v34 = vadd.f32 %v2275_v14, %v1256_v30 }
 0x2ec   : > { %v1258_v33 = vpop.f32.mrf.mxu0 }
 0x2ed   : > { %v1259_v35 = vadd.f32 %v2275_v14, %v1258_v33 }
 0x2ef   : > { %v1732_v36 = vpack.c.bf16 %v1259_v35, %v1257_v34 }
 0x2f1   : > { %1752 = vst [vmem:[%s2283_s19 + $0x70] sm:$0xff] %v1732_v36  }
 0x2fa   : > { %v1261_v37 = vpop.f32.mrf.mxu2 }
 0x2fb   : > { %v1262_v38 = vadd.f32 %v2275_v14, %v1261_v37 }
 0x302   : > { %v1263_v29 = vpop.f32.mrf.mxu2 }
 0x303   : > { %v1264_v9 = vadd.f32 %v2275_v14, %v1263_v29 }
 0x305   : > { %v1737_v40 = vpack.c.bf16 %v1264_v9, %v1262_v38 }
 0x307   : > { %1753 = vst [vmem:[%s2283_s19 + $0x78] sm:$0xff] %v1737_v40  }
 0x308   : > { %1831 = shalt.err (!%p1828_p3)
}
 0x309   : > { %s1868_s8 = smov 64   ;;  %s1869_s19 = smov 4  }
 0x30a   : > { %1761 = dma.vmem_to_hbm [thread:$0]  (%p1948_p5), %s1344_s29, 2048, %s1346_s9, %s1331_s13, %s1868_s8, %s1868_s8, %s1869_s19  }
 0x30b PF: > { %p1767_p4 = scmp.ge.s32.totalorder %s1866_s27, 2  ;;  %s1360_s21 = sand.u32 1, %s1854_s24  }
 0x30c   : > { %s1361_s22 = scalar_lea.sflag [#allocation3], %s1360_s21 }
 0x30d   : > { %p1764_p7 = pnand %p1767_p4, %p1952_p6 }
 0x30f   : > { %p1765_p8 = pneg %p1764_p7 }
 0x311   : > { %1849 = dma.done.wait (%p1765_p8), %s1361_s22, 2048  }
 0x312   : > { %1851 = vsyncadd (%p1765_p8), %s1361_s22, 4294965248  ;;  %p17_p9 = scmp.ge.s32.totalorder %s1935_s30, 4   ;;  %s2394_s24 = smov %s1858_s25 }
 0x313   : > { %s2395_s25 = smov %s1862_s26  ;;  %s2396_s26 = smov %s1946_s10 }
 0x314   : > { %s2397_s27 = smov %s1935_s30  ;;  %19 = sbr.rel (!%p17_p9) target bundleno = 3 (0x3), region = 83 }
 0x319   :  { %1367 = vsyncpa [#allocation3], 1 }
 0x31a   :  { %1369 = vsyncpa [#allocation3 + $0x1], 1 }

</bundles_post_ra>
